<compile_context>
chip_gen: v6e
topology: v6e:2x2x1
jax: 0.10.0
libtpu: 0.0.40
codegen_flags: <defaults>
</compile_context>

<pallas_src>
import jax
import jax.numpy as jnp
import numpy as np
from jax.experimental import pallas as pl
from jax.experimental.pallas import tpu as pltpu


def _round_up(x, m):
    return (x + m - 1) // m * m


# ----------------------------------------------------------------------------
# Kernel: one (tm, H) x (H, tn) tile of the bias-free linear decoder
# ----------------------------------------------------------------------------
def _decoder_kernel(x_ref, w_ref, o_ref):
    o_ref[...] = jnp.dot(
        x_ref[...], w_ref[...], preferred_element_type=jnp.float32
    ).astype(o_ref.dtype)


def _decoder_matmul(x2d, w):
    """x2d: (M, H) activations, w: (H, V) weight -> (M, V) logits."""
    M, H = x2d.shape
    _, V = w.shape

    # Lane/sublane-friendly padding: unmasked vld / MXU / vst.
    tn = 128
    V_pad = _round_up(V, tn)
    if M >= 256:
        tm = 256
        M_pad = _round_up(M, tm)
    else:
        tm = _round_up(M, 8)
        M_pad = tm

    x_p = jnp.pad(x2d, ((0, M_pad - M), (0, 0))) if M_pad != M else x2d
    w_p = jnp.pad(w, ((0, 0), (0, V_pad - V))) if V_pad != V else w

    out_p = pl.pallas_call(
        _decoder_kernel,
        out_shape=jax.ShapeDtypeStruct((M_pad, V_pad), jnp.float32),
        grid_spec=pltpu.PrefetchScalarGridSpec(
            num_scalar_prefetch=0,
            grid=(M_pad // tm, V_pad // tn),
            in_specs=[
                pl.BlockSpec((tm, H), lambda i, j: (i, 0)),
                pl.BlockSpec((H, tn), lambda i, j: (0, j)),
            ],
            out_specs=pl.BlockSpec((tm, tn), lambda i, j: (i, j)),
        ),
        compiler_params=pltpu.CompilerParams(
            dimension_semantics=("parallel", "parallel")),
    )(x_p, w_p)

    return out_p[:M, :V]


# ----------------------------------------------------------------------------
# Module wrapper (eval / inference semantics)
# ----------------------------------------------------------------------------
def linear_decoder(inputs, weight):
    """inputs = (raw_outputs, outputs): lists of (S, B, H) arrays, like the
    torch module.  weight: (H, V) = transpose of torch's (out, in) storage.
    """
    _, outputs = inputs
    x = outputs[-1]                          # (S, B, H)  -- last RNN layer
    # LockedDropout: identity when not training.
    # TODO(synk): training-mode LockedDropout (bernoulli (1,B,H) mask) not implemented.
    S, B, H = x.shape
    x2d = x.reshape(S * B, H)                # view(S*B, H)
    logits = _decoder_matmul(x2d, weight)    # Linear(H, V, bias=False)
    return logits.reshape(-1, logits.shape[1])   # view(-1, V)


def init_decoder_weight(key, in_features, out_features, initrange=0.1):
    # torch: self.decoder.weight.data.uniform_(-initrange, initrange), (V, H).
    # We store it transposed, (H, V), so the kernel computes x @ W.
    return jax.random.uniform(
        key, (in_features, out_features), jnp.float32, -initrange, initrange)


# ----------------------------------------------------------------------------
# Pure-JAX reference
# ----------------------------------------------------------------------------
def reference_forward(last_output, weight):
    S, B, H = last_output.shape
    return last_output.reshape(S * B, H) @ weight


if __name__ == "__main__":
    key = jax.random.PRNGKey(0)
    S, B, H = 8, 2, 32                     # seq=8, batch=2, hidden=32
    V = 100                                # out_features (small "vocab")

    k_out, k_raw, k_w = jax.random.split(key, 3)
    # Lists of per-RNN-layer outputs; the module only consumes outputs[-1].
    outputs = [jax.random.normal(k_out, (S, B, H), jnp.float32),
               jax.random.normal(jax.random.fold_in(k_out, 1), (S, B, H), jnp.float32)]
    raw_outputs = [jax.random.normal(k_raw, (S, B, H), jnp.float32),
                   jax.random.normal(jax.random.fold_in(k_raw, 1), (S, B, H), jnp.float32)]

    weight = init_decoder_weight(k_w, H, V)

    logits = linear_decoder((raw_outputs, outputs), weight)
    logits = jax.block_until_ready(logits)

    ref = reference_forward(outputs[-1], weight)
    assert logits.shape == (S * B, V)
    np.testing.assert_allclose(np.asarray(logits), np.asarray(ref),
                               rtol=1e-5, atol=1e-5)

    print("KERNEL_OK")
</pallas_src>

<mosaic_0001>
module attributes {stable_mosaic.version = 11 : i64} {
  func.func @_decoder_kernel(%arg0: i32, %arg1: i32, %arg2: memref<16x32xf32, #tpu.memory_space<vmem>>, %arg3: memref<32x128xf32, #tpu.memory_space<vmem>>, %arg4: memref<16x128xf32, #tpu.memory_space<vmem>>) attributes {dimension_semantics = [#tpu.dimension_semantics<parallel>, #tpu.dimension_semantics<parallel>], iteration_bounds = array<i64: 1, 1>, scalar_prefetch = 0 : i64, scratch_operands = 0 : i64, tpu.core_type = #tpu.core_type<tc>, window_params = [{transform_indices = @transform_0, window_bounds = array<i64: 16, 32>}, {transform_indices = @transform_1, window_bounds = array<i64: 32, 128>}, {transform_indices = @transform_2, window_bounds = array<i64: 16, 128>}]} {
    %c0 = arith.constant 0 : index
    %c0_0 = arith.constant 0 : index
    %0 = vector.load %arg2[%c0, %c0_0] : memref<16x32xf32, #tpu.memory_space<vmem>>, vector<16x32xf32>
    %c0_1 = arith.constant 0 : index
    %c0_2 = arith.constant 0 : index
    %1 = vector.load %arg3[%c0_1, %c0_2] : memref<32x128xf32, #tpu.memory_space<vmem>>, vector<32x128xf32>
    %cst = arith.constant dense<0.000000e+00> : vector<16x128xf32>
    %2 = tpu.matmul %0, %1, %cst {dimension_numbers = #tpu.dot_dimension_numbers<[1], [0], [0], [1], [0, 0, 1, 1], [], []>} : vector<16x32xf32>, vector<32x128xf32>, vector<16x128xf32> -> vector<16x128xf32>
    %c0_3 = arith.constant 0 : index
    %c0_4 = arith.constant 0 : index
    %3 = vector.load %arg4[%c0_3, %c0_4] : memref<16x128xf32, #tpu.memory_space<vmem>>, vector<16x128xf32>
    tpu.vector_store %arg4[%c0_3, %c0_4], %2 {strides = array<i32>} : memref<16x128xf32, #tpu.memory_space<vmem>>, vector<16x128xf32>,
    return
  }
  func.func @transform_0(%arg0: i32, %arg1: i32) -> (i32, i32) {
    %c0_i32 = arith.constant 0 : i32
    %c0_i32_0 = arith.constant 0 : i32
    return %arg0, %c0_i32 : i32, i32
  }
  func.func @transform_1(%arg0: i32, %arg1: i32) -> (i32, i32) {
    %c0_i32 = arith.constant 0 : i32
    %c0_i32_0 = arith.constant 0 : i32
    return %c0_i32, %arg1 : i32, i32
  }
  func.func @transform_2(%arg0: i32, %arg1: i32) -> (i32, i32) {
    %c0_i32 = arith.constant 0 : i32
    return %arg0, %arg1 : i32, i32
  }
}

</mosaic_0001>

<bundles_post_ra>
// kernel: tpu_custom_call.1
= control target key start
LH: loop header
LB: loop body
LE: loop exit
PB: predicated region body
PF: predicated region fallthrough
CT: control target
= control target key end

     0   :  { %7 = vsyncpa [#allocation3], 0  ;;  %s278_s0 = inlined_call_operand.hbm [shape: f32[16,32], index: 0, kind: input, shape index: {}]   ;;  %s279_s1 = inlined_call_operand.hbm [shape: f32[32,128], index: 1, kind: input, shape index: {}]   ;;  %s280_s2 = inlined_call_operand.hbm [shape: f32[16,128], index: 2, kind: output, shape index: {}]  }
   0x1   :  { %8 = vsyncpa [#allocation6], 0 }
   0x2   :  { %9 = vsyncpa [#allocation4], 0  ;;  %s238_s9 = smov [#allocation2]  }
   0x3   :  { %s15_s10 = sshll.u32 %s238_s9, 4  ;;  %s16_s10 = int_to_ptr.vmem [resolvable:$true] %s15_s10 }
   0x4   :  { %s180_s11 = scalar_lea.vmem %s16_s10, 256  ;;  %p185_p1 = scmp.lt.s32.totalorder %s16_s10, %s16_s10 }
   0x5   :  { %p181_p0 = scmp.ne.s32.totalorder %s16_s10, %s180_s11  ;;  %p186_p2 = scmp.lt.s32.totalorder %s180_s11, %s180_s11 }
   0x7   :  { %p187_p3 = por %p186_p2, %p185_p1 }
   0x9   :  { %p188_p4 = pnand %p187_p3, %p181_p0 }
   0xb   :  { %191 = shalt.err (!%p188_p4)
}
   0xc   :  { %s239_s12 = smov 128   ;;  %s240_s13 = smov 8  }
   0xd   :  { %21 = dma.hbm_to_vmem [thread:$0]  %s278_s0, 256, %s16_s10, [#allocation3], %s239_s12, %s239_s12, %s240_s13  }
   0xe   :  { %s241_s16 = smov [#allocation5]  }
   0xf   :  { %s27_s17 = sshll.u32 %s241_s16, 4  ;;  %s28_s17 = int_to_ptr.vmem [resolvable:$true] %s27_s17 }
  0x10   :  { %s200_s18 = scalar_lea.vmem %s28_s17, 512  ;;  %p205_p6 = scmp.lt.s32.totalorder %s28_s17, %s28_s17 }
  0x11   :  { %p201_p5 = scmp.ne.s32.totalorder %s28_s17, %s200_s18  ;;  %p206_p7 = scmp.lt.s32.totalorder %s200_s18, %s200_s18 }
  0x13   :  { %p207_p8 = por %p206_p7, %p205_p6 }
  0x15   :  { %p208_p9 = pnand %p207_p8, %p201_p5 }
  0x17   :  { %211 = shalt.err (!%p208_p9)
}
  0x18   :  { %33 = dma.hbm_to_vmem [thread:$0]  %s279_s1, 512, %s28_s17, [#allocation6], %s239_s12, %s239_s12, %s240_s13  }
  0x19   :  { %232 = dma.done.wait [#allocation3], 256  }
  0x1a   :  { %233 = vsyncadd [#allocation3], 4294967040 }
  0x1b   :  { %234 = dma.done.wait [#allocation6], 512  }
  0x1c   :  { %235 = vsyncadd [#allocation6], 4294966784  ;;  %vm46_vm0 = vcmask 261120   ;;  %v45_v0 = vld [vmem:[#allocation5 + $0x18] sm:$0xff]  ;;  %v44_v1 = vld [vmem:[#allocation5 + $0x10] sm:$0xff]  ;;  %s242_s0 = smov [#allocation7]  }
  0x1d   :  { %156 = vmatprep.subr.mxu0 %v45_v0  ;;  %v40_v2 = vld [vmem:[#allocation2] sm:$0xff]  ;;  %v43_v3 = vld [vmem:[#allocation5 + $0x8] sm:$0xff]  ;;  %v42_v4 = vld [vmem:[#allocation5] sm:$0xff]  ;;  %s135_s1 = sshll.u32 %s242_s0, 4  ;;  %s136_s1 = int_to_ptr.vmem [resolvable:$true] %s135_s1 }
  0x1e   :  { %157 = vmatpush3.msra.mxu0 %v45_v0  ;;  %164 = vmatprep.mubr.msk.f32.mxu0 %vm46_vm0, %v40_v2  ;;  %v41_v5 = vld [vmem:[#allocation2 + $0x8] sm:$0xff]  ;;  %s212_s21 = scalar_lea.vmem %s136_s1, 256  ;;  %p217_p11 = scmp.lt.s32.totalorder %s136_s1, %s136_s1 }
  0x1f   :  { %158 = vmatprep.subr.mxu0 %v44_v1  ;;  %p213_p10 = scmp.ne.s32.totalorder %s136_s1, %s212_s21  ;;  %p218_p12 = scmp.lt.s32.totalorder %s212_s21, %s212_s21 }
  0x20   :  { %159 = vmatpush3.msra.mxu0 %v44_v1 }
  0x21   :  { %160 = vmatprep.subr.mxu0 %v43_v3  ;;  %p219_p13 = por %p218_p12, %p217_p11 }
  0x22   :  { %161 = vmatpush3.msra.mxu0 %v43_v3 }
  0x23   :  { %162 = vmatprep.subr.mxu0 %v42_v4  ;;  %p220_p0 = pnand %p219_p13, %p213_p10 }
  0x24   :  { %163 = vmatpush3.msra.mxu0 %v42_v4 }
  0x25   :  { %165 = vmatmul.mubr.msk.f32.vlgmr.msra.gmra.mxu0 %vm46_vm0, %v41_v5 }
  0xe5   :  { %v166_v6 = vpop.f32.mrf.mxu0 }
  0xe6   :  { %129 = vst [vmem:[#allocation7 + $0x8] sm:$0xff] %v166_v6 }
  0xe7   :  { %v119_v7 = vpop.f32.mrf.mxu0 }
  0xe8   :  { %128 = vst [vmem:[#allocation7] sm:$0xff] %v119_v7 }
  0xe9   :  { %223 = shalt.err (!%p220_p0)
}
  0xea   :  { %141 = dma.vmem_to_hbm [thread:$0]  %s136_s1, 256, %s280_s2, [#allocation4], %s239_s12, %s239_s12, %s240_s13  }
  0xeb   :  { %236 = dma.done.wait [#allocation4], 256  }
  0xec   :  { %237 = vsyncadd [#allocation4], 4294967040 }
  0xed   :  { %145 = vsyncpa [#allocation3], 1 }
  0xee   :  { %146 = vsyncpa [#allocation6], 1 }
  0xef   :  { %147 = vsyncpa [#allocation4], 1 }

</bundles_post_ra>
